<compile_context>
chip_gen: v5e
topology: v5e:2x2
jax: 0.10.0
libtpu: 0.0.40
codegen_flags: <defaults>
</compile_context>

<pallas_src>
import functools
import math

import jax
import jax.numpy as jnp
from jax.experimental import pallas as pl
from jax.experimental.pallas import tpu as pltpu


def _lora_merge_kernel(w_ref, b_ref, a_ref, o_ref, *, scaling):
    a_tile = a_ref[...].astype(jnp.float32)                   # (rank, tn)
    # Fold scaling into the tiny operand: tm*rank multiplies instead of tm*tn.
    b_scaled = b_ref[...].astype(jnp.float32) * scaling       # (tm, rank)
    delta = jnp.dot(b_scaled, a_tile,
                    preferred_element_type=jnp.float32)       # small-K MXU matmul
    o_ref[...] = (w_ref[...].astype(jnp.float32) + delta).astype(o_ref.dtype)


def lora_linear_forward(weight, lora_a, lora_b, *, alpha=1.0, dropout_p=0.0,
                        tm=256, tn=None, merge_in_place=False,
                        vmem_limit_bytes=48 * 1024 * 1024):
    """Pallas equivalent of LoraLinear.forward(weight).

    weight: (fan_out, fan_in)   f32 or bf16
    lora_a: (rank, fan_in)
    lora_b: (fan_out, rank)
    """
    fan_out, fan_in = weight.shape
    rank = lora_a.shape[0]
    assert lora_a.shape == (rank, fan_in)
    assert lora_b.shape == (fan_out, rank)
    scaling = alpha / rank
    # TODO(synk): training-mode dropout on lora_a (dropout_p > 0) not implemented;
    # the module default (0.0) is an identity in the forward pass.
    assert dropout_p == 0.0

    itemsize = jnp.dtype(weight.dtype).itemsize
    sublane = 16 if itemsize == 2 else 8

    # Default tn keeps the per-step weight DMA around ~4 MiB regardless of
    # dtype (bf16 doubles tn so step overhead stays amortized).
    if tn is None:
        tn = max(128, (4 * 1024 * 1024) // (tm * itemsize))

    # Tile clamping: full extent when the array is small, otherwise round the
    # requested tile down to a legal (sublane, lane)-aligned size.
    tm = fan_out if fan_out <= tm else max(sublane, (tm // sublane) * sublane)
    tn = fan_in if fan_in <= tn else max(128, (tn // 128) * 128)

    grid_m = pl.cdiv(fan_out, tm)
    grid_n = pl.cdiv(fan_in, tn)

    kernel = functools.partial(_lora_merge_kernel, scaling=scaling)

    return pl.pallas_call(
        kernel,
        out_shape=jax.ShapeDtypeStruct((fan_out, fan_in), weight.dtype),
        grid_spec=pltpu.PrefetchScalarGridSpec(
            num_scalar_prefetch=0,
            # Column block (j) outer, row block (i) inner: the (rank, tn)
            # lora_a tile is invariant over the inner loop; only the tiny
            # (tm, rank) lora_b tile re-fetches per inner step.
            grid=(grid_n, grid_m),
            in_specs=[
                # weight stream: big lane-dense tiles
                pl.BlockSpec((tm, tn), lambda j, i: (i, j)),
                # lora_b rows: tiny, re-fetched per inner step (negligible)
                pl.BlockSpec((tm, rank), lambda j, i: (i, 0)),
                # lora_a column block: invariant over inner loop
                pl.BlockSpec((rank, tn), lambda j, i: (0, j)),
            ],
            out_specs=pl.BlockSpec((tm, tn), lambda j, i: (i, j)),
        ),
        compiler_params=pltpu.CompilerParams(
            dimension_semantics=("parallel", "parallel"),
            vmem_limit_bytes=vmem_limit_bytes),
        input_output_aliases={0: 0} if merge_in_place else {},
    )(weight, lora_b, lora_a)


def _reference(weight, lora_a, lora_b, alpha):
    rank = lora_a.shape[0]
    return (weight.astype(jnp.float32)
            + (lora_b.astype(jnp.float32) @ lora_a.astype(jnp.float32))
            * (alpha / rank)).astype(weight.dtype)


if __name__ == "__main__":
    key = jax.random.PRNGKey(0)

    def make_inputs(key, fan_out, fan_in, rank, dtype=jnp.float32):
        k_w, k_a, k_b = jax.random.split(key, 3)
        weight = jax.random.normal(k_w, (fan_out, fan_in), jnp.float32).astype(dtype)
        # kaiming_uniform_(a=sqrt(5)) on (rank, fan_in) => U(-1/sqrt(fan_in), 1/sqrt(fan_in))
        bound_a = 1.0 / math.sqrt(fan_in)
        lora_a = jax.random.uniform(k_a, (rank, fan_in), jnp.float32,
                                    minval=-bound_a, maxval=bound_a).astype(dtype)
        # Module initializes lora_b to zeros; use small non-zero values so the
        # matmul path is actually exercised.
        lora_b = (0.01 * jax.random.normal(k_b, (fan_out, rank), jnp.float32)).astype(dtype)
        return weight, lora_a, lora_b

    k1, k2, k3 = jax.random.split(key, 3)

    # Test 1: aligned shapes, multi-tile grid (2 x 2) plus default (single-tile) call.
    w, a, b = make_inputs(k1, fan_out=256, fan_in=512, rank=4)
    out_tiled = jax.block_until_ready(
        lora_linear_forward(w, a, b, alpha=1.0, tm=128, tn=256))
    out_default = jax.block_until_ready(
        lora_linear_forward(w, a, b, alpha=1.0))
    ref = _reference(w, a, b, alpha=1.0)
    assert out_tiled.shape == (256, 512)
    assert jnp.allclose(out_tiled, ref, atol=1e-5, rtol=1e-5)
    assert jnp.allclose(out_default, ref, atol=1e-5, rtol=1e-5)

    # Test 2: ragged shapes (edge tiles in both grid axes).
    w2, a2, b2 = make_inputs(k2, fan_out=200, fan_in=320, rank=4)
    out2 = jax.block_until_ready(
        lora_linear_forward(w2, a2, b2, alpha=2.0, tm=128, tn=256))
    ref2 = _reference(w2, a2, b2, alpha=2.0)
    assert out2.shape == (200, 320)
    assert jnp.allclose(out2, ref2, atol=1e-5, rtol=1e-5)

    # Test 3: bf16 weights (dtype-scaled tiling + store cast path).
    w3, a3, b3 = make_inputs(k3, fan_out=256, fan_in=512, rank=8, dtype=jnp.bfloat16)
    out3 = jax.block_until_ready(
        lora_linear_forward(w3, a3, b3, alpha=1.0, tm=128, tn=256))
    ref3 = _reference(w3, a3, b3, alpha=1.0)
    assert out3.dtype == jnp.bfloat16
    assert jnp.allclose(out3.astype(jnp.float32), ref3.astype(jnp.float32),
                        atol=2e-2, rtol=2e-2)

    print("KERNEL_OK")
</pallas_src>

<mosaic_0001>
module attributes {stable_mosaic.version = 11 : i64} {
  func.func @_lora_merge_kernel(%arg0: i32, %arg1: i32, %arg2: memref<128x256xf32, #tpu.memory_space<vmem>>, %arg3: memref<128x4xf32, #tpu.memory_space<vmem>>, %arg4: memref<4x256xf32, #tpu.memory_space<vmem>>, %arg5: memref<128x256xf32, #tpu.memory_space<vmem>>) attributes {dimension_semantics = [#tpu.dimension_semantics<parallel>, #tpu.dimension_semantics<parallel>], iteration_bounds = array<i64: 2, 2>, scalar_prefetch = 0 : i64, scratch_operands = 0 : i64, tpu.core_type = #tpu.core_type<tc>, window_params = [{transform_indices = @transform_0, window_bounds = array<i64: 128, 256>}, {transform_indices = @transform_1, window_bounds = array<i64: 128, 4>}, {transform_indices = @transform_2, window_bounds = array<i64: 4, 256>}, {transform_indices = @transform_3, window_bounds = array<i64: 128, 256>}]} {
    %c0 = arith.constant 0 : index
    %c0_0 = arith.constant 0 : index
    %0 = vector.load %arg4[%c0, %c0_0] : memref<4x256xf32, #tpu.memory_space<vmem>>, vector<4x256xf32>
    %c0_1 = arith.constant 0 : index
    %c0_2 = arith.constant 0 : index
    %1 = vector.load %arg3[%c0_1, %c0_2] : memref<128x4xf32, #tpu.memory_space<vmem>>, vector<128x4xf32>
    %cst = arith.constant 2.500000e-01 : f32
    %2 = vector.broadcast %cst : f32 to vector<128x4xf32>
    %3 = arith.mulf %1, %2 : vector<128x4xf32>
    %cst_3 = arith.constant dense<0.000000e+00> : vector<128x256xf32>
    %4 = tpu.matmul %3, %0, %cst_3 {dimension_numbers = #tpu.dot_dimension_numbers<[1], [0], [0], [1], [0, 0, 1, 1], [], []>} : vector<128x4xf32>, vector<4x256xf32>, vector<128x256xf32> -> vector<128x256xf32>
    %c0_4 = arith.constant 0 : index
    %c0_5 = arith.constant 0 : index
    %5 = vector.load %arg2[%c0_4, %c0_5] : memref<128x256xf32, #tpu.memory_space<vmem>>, vector<128x256xf32>
    %6 = arith.addf %5, %4 : vector<128x256xf32>
    %c0_6 = arith.constant 0 : index
    %c0_7 = arith.constant 0 : index
    %7 = vector.load %arg5[%c0_6, %c0_7] : memref<128x256xf32, #tpu.memory_space<vmem>>, vector<128x256xf32>
    tpu.vector_store %arg5[%c0_6, %c0_7], %6 {strides = array<i32>} : memref<128x256xf32, #tpu.memory_space<vmem>>, vector<128x256xf32>,
    return
  }
  func.func @transform_0(%arg0: i32, %arg1: i32) -> (i32, i32) {
    %c0_i32 = arith.constant 0 : i32
    return %arg1, %arg0 : i32, i32
  }
  func.func @transform_1(%arg0: i32, %arg1: i32) -> (i32, i32) {
    %c0_i32 = arith.constant 0 : i32
    %c0_i32_0 = arith.constant 0 : i32
    return %arg1, %c0_i32 : i32, i32
  }
  func.func @transform_2(%arg0: i32, %arg1: i32) -> (i32, i32) {
    %c0_i32 = arith.constant 0 : i32
    %c0_i32_0 = arith.constant 0 : i32
    return %c0_i32, %arg0 : i32, i32
  }
  func.func @transform_3(%arg0: i32, %arg1: i32) -> (i32, i32) {
    %c0_i32 = arith.constant 0 : i32
    return %arg1, %arg0 : i32, i32
  }
}

</mosaic_0001>

<bundles_post_ra>
// kernel: tpu_custom_call.1
= control target key start
LH: loop header
LB: loop body
LE: loop exit
PB: predicated region body
PF: predicated region fallthrough
CT: control target
= control target key end

     0   :  { %8 = vsyncpa [#allocation3], 0  ;;  %s1290_s0 = inlined_call_operand.hbm [shape: f32[256,512], index: 0, kind: input, shape index: {}]   ;;  %s1291_s1 = inlined_call_operand.vmem [shape: f32[256,4], index: 1, kind: input, shape index: {}]   ;;  %s1292_s2 = inlined_call_operand.vmem [shape: f32[4,512], index: 2, kind: input, shape index: {}]   ;;  %s1293_s3 = inlined_call_operand.hbm [shape: f32[256,512], index: 3, kind: output, shape index: {}]  }
   0x1   :  { %10 = vsyncpa [#allocation3 + $0x1], 0 }
   0x2   :  { %11 = vsyncpa [#allocation4], 0 }
   0x3   :  { %13 = vsyncpa [#allocation4 + $0x1], 0  ;;  %s1009_s12 = smov 0   ;;  %s1011_s13 = smov 0  }
   0x4   :  { %s1013_s14 = smov 0   ;;  %s1015_s15 = smov 0  }
   0x5   :  { %s1017_s16 = smov 0   ;;  %s1019_s17 = smov 0  }
   0x6   :  { %s1021_s18 = smov 0   ;;  %s1023_s19 = smov 0  }
   0x7 LB: > { %1297 = sst [smem:[#allocation8_spill]] %s977_s18  ;;  %s708_s20 = sadd.s32 4294967295, %s981_s19   ;;  %s981_s19 = sphi %s1023_s19, %s19_s19   ;;  %s977_s18 = sphi %s1021_s18, %s1308_s18   ;;  %s973_s17 = sphi %s1019_s17, %s1313_s17   ;;  %s969_s16 = sphi %s1017_s16, %s1306_s16   ;;  %s965_s15 = sphi %s1015_s15, %s1312_s15   ;;  %s961_s14 = sphi %s1013_s14, %s1311_s14   ;;  %s957_s13 = sphi %s1011_s13, %s1310_s13   ;;  %s953_s12 = sphi %s1009_s12, %s1309_s12  }
   0x8   : > { %s709_s21 = sadd.s32 4294967294, %s981_s19   ;;  %s28_s22 = sadd.s32 1, %s973_s17 }
   0x9   : > { %s31_s23 = sadd.s32 1, %s977_s18  ;;  %p29_p0 = scmp.ge.s32.totalorder %s28_s22, 2 }
   0xa   : > { %s40_s24 = sadd.s32 1, %s961_s14  ;;  %p47_p1 = scmp.ne.s32.totalorder %s961_s14, %s957_s13 }
   0xb   : > { %p48_p2 = scmp.eq.s32.totalorder %s981_s19, 0  ;;  %s1315_s22 = smov (%p29_p0, %s28_s22), 0 }
   0xc   : > { %1298 = sst [smem:[#allocation9_spill]] %s1315_s22  ;;  %s1317_s23 = smov (!%p29_p0, %s31_s23), %s977_s18 }
   0xd   : > { %s35_s25 = ssub.s32 %s973_s17, %s1315_s22  ;;  %p1062_p3 = por %p48_p2, %p47_p1 }
   0xe   : > { %p33_p4 = scmp.ge.s32.totalorder %s1317_s23, 2  ;;  %p53_p5 = scmp.ne.s32.totalorder %s957_s13, %s953_s12 }
   0xf   : > { %p54_p6 = scmp.eq.s32.totalorder %s708_s20, 0  ;;  %p131_p7 = scmp.eq.s32.totalorder %s708_s20, 3 }
  0x10   : > { %s1319_s23 = smov (%p33_p4, %s1317_s23), 0  ;;  %p137_p10 = scmp.eq.s32.totalorder %s709_s21, 3 }
  0x11   : > { %1300 = sst [smem:[#allocation10_spill]] %s1319_s23  ;;  %p1070_p8 = por %p54_p6, %p53_p5 }
  0x12   : > { %p1074_p9 = por %p131_p7, %p47_p1  ;;  %s36_s29 = ssub.s32 %s977_s18, %s1319_s23 }
  0x13   : > { %s37_s30 = sor.u32 %s36_s29, %s35_s25  ;;  %p1080_p12 = por %p137_p10, %p53_p5 }
  0x14   : > { %p38_p11 = scmp.eq.s32.totalorder %s37_s30, 0  ;;  %p781_p13 = scmp.lt.s32.totalorder %s981_s19, 4 }
  0x15   : > { %s157_s5 = sand.u32 1, %s961_s14   ;;  %s714_s8 = sshll.u32 %s977_s18, 1 }
  0x16   : > { %s1087_s6 = scalar_select %p38_p11, %s961_s14, %s40_s24  }
  0x17   : > { %s712_s7 = sshll.u32 %s157_s5, 8  ;;  %s765_s9 = sshll.u32 %s973_s17, 6 }
  0x18   : > { %1304 = sst [smem:[#allocation11_spill]] %s1087_s6  ;;  %s161_s10 = scalar_lea.vmem [#allocation2], %s712_s7 }
  0x19   : > { %s172_s11 = sshll.u32 %s161_s10, 4  ;;  %s167_s20 = sadd.s32 %s765_s9, %s714_s8  ;;  %s173_s11 = int_to_ptr.vmem [resolvable:$true] %s172_s11 }
  0x1a   : > { %s716_s21 = sshll.u32 %s167_s20, 3  ;;  %p774_p0 = pnand %p781_p13, %p1062_p3 }
  0x1b   : > { %s169_s30 = scalar_lea.hbm %s1290_s0, %s716_s21  ;;  %p717_p1 = scmp.ge.s32.totalorder %s981_s19, 1 }
  0x1c   : > { %s170_s23 = sshll.u32 %s169_s30, 4  ;;  %s158_s24 = scalar_lea.sflag [#allocation3], %s157_s5  ;;  %s171_s23 = int_to_ptr.hbm [resolvable:$true] %s170_s23 }
  0x1d   : > { %s983_s22 = smov 512   ;;  %s984_s6 = smov 256  }
  0x1e   : > { %s985_s18 = smov 16   ;;  %p198_p2 = scmp.lt.s32.totalorder %s981_s19, 5 }
  0x1f   : > { %776 = dma.hbm_to_vmem [thread:$0]  (!%p774_p0), %s171_s23, 4096, %s173_s11, %s158_s24, %s983_s22, %s984_s6, %s985_s18  }
  0x20   : > { %p199_p4 = pnand %p717_p1, %p198_p2 }
  0x21   : > { %s1099_s7 = sand.u32 (!%p199_p4), 1, %s957_s13  }
  0x22   : > { %202 = sbr.rel (%p199_p4) target bundleno = 253 (0xfd), region = 32  ;;  %s718_s26 = sshll.u32 (!%p199_p4), %s1099_s7, 8 }
  0x23   : > { %s205_s8 = scalar_lea.sflag (!%p199_p4), [#allocation3], %s1099_s7  ;;  %s1105_s9 = scalar_lea.vmem (!%p199_p4), [#allocation2], %s718_s26 }
  0x27   : > { %944 = dma.done.wait (%p1070_p8), %s205_s8, 4096  }
  0x28   : > { %946 = vsyncadd (%p1070_p8), %s205_s8, 4294963200  ;;  %s1112_s18 = sshll.u32 %s969_s16, 1  ;;  %s720_s22 = sshll.u32 %s965_s15, 4  ;;  %vm344_vm0 = vcmask 1043456   ;;  %vm295_vm1 = vcmask 31744   ;;  %v479_v35 = vld [vmem:[%s1105_s9] sm:$0xff] }
  0x29   : > { %p251_p3 = scmp.lt.s32.totalorder %s1112_s18, 3  ;;  %p245_p5 = scmp.lt.s32.totalorder %s720_s22, 31  ;;  %v480_v36 = vld [vmem:[%s1105_s9 + $0x8] sm:$0xff]  ;;  %v495_v41 = vld [vmem:[%s1105_s9 + $0x80] sm:$0xff]  ;;  %v481_v47 = vld [vmem:[%s1105_s9 + $0x10] sm:$0xff] }
  0x2a   : > { %v496_v42 = vld [vmem:[%s1105_s9 + $0x88] sm:$0xff]  ;;  %s1179_s25 = scalar_lea.vmem [#allocation5], %s718_s26  ;;  %v482_v48 = vld [vmem:[%s1105_s9 + $0x18] sm:$0xff]  ;;  %v497_v53 = vld [vmem:[%s1105_s9 + $0x90] sm:$0xff]  ;;  %s766_s29 = sshll.u32 %s965_s15, 6 }
  0x2b   : > { %s252_s23 = scalar_select %p251_p3, %s1112_s18, 3  ;;  %v498_v54 = vld [vmem:[%s1105_s9 + $0x98] sm:$0xff]  ;;  %v483_v59 = vld [vmem:[%s1105_s9 + $0x20] sm:$0xff]  ;;  %v484_v60 = vld [vmem:[%s1105_s9 + $0x28] sm:$0xff] }
  0x2c   : > { %s1321_s22 = smov (!%p245_p5, %s720_s22), 31  ;;  %s588_s30 = sadd.s32 %s766_s29, %s1112_s18 }
  0x2d   : > { %s723_s5 = sshll.u32 %s252_s23, 2  ;;  %s721_s27 = sshll.u32 %s1321_s22, 3 }
  0x2e   : > { %s254_s11 = scalar_lea.vmem %s1292_s2, %s723_s5  ;;  %s1123_s16 = scalar_lea.vmem %s1291_s1, %s721_s27 }
  0x2f   : > { %v258_v0 = vld [vmem:[%s254_s11] sm:$0xff]  ;;  %v268_v7 = vld [vmem:[%s1123_s16 + $0x48] sm:$0xff]  ;;  %v269_v11 = vld [vmem:[%s1123_s16 + $0x50] sm:$0xff]  ;;  %s762_s24 = sshll.u32 %s588_s30, 3  ;;  %s591_s22 = sshll.u32 %s1179_s25, 4  ;;  %s592_s22 = int_to_ptr.vmem [resolvable:$true] %s591_s22 }
  0x30   : > { %292 = vst [vmem:[#allocation1] ss:$2 sm:$0xff] %v258_v0  ;;  %v267_v1 = vld [vmem:[%s1123_s16 + $0x40] sm:$0xff]  ;;  %v260_v8 = vld [vmem:[%s1123_s16 + $0x8] sm:$0xff]  ;;  %v284_v9 = vmul.f32 0.25, %v268_v7  ;;  %v261_v12 = vld [vmem:[%s1123_s16 + $0x10] sm:$0xff]  ;;  %s590_s8 = scalar_lea.hbm %s1293_s3, %s762_s24 }
  0x31   : > { %v259_v2 = vld [vmem:[%s1123_s16] sm:$0xff]  ;;  %v283_v3 = vmul.f32 0.25, %v267_v1  ;;  %v276_v10 = vmul.f32 0.25, %v260_v8  ;;  %v285_v13 = vmul.f32 0.25, %v269_v11  ;;  %v277_v14 = vmul.f32 0.25, %v261_v12  ;;  %v270_v15 = vld [vmem:[%s1123_s16 + $0x58] sm:$0xff] }
  0x32   : > { %v275_v4 = vmul.f32 0.25, %v259_v2  ;;  %v262_v16 = vld [vmem:[%s1123_s16 + $0x18] sm:$0xff]  ;;  %v286_v17 = vmul.f32 0.25, %v270_v15  ;;  %v271_v19 = vld [vmem:[%s1123_s16 + $0x60] sm:$0xff]  ;;  %v272_v23 = vld [vmem:[%s1123_s16 + $0x68] sm:$0xff]  ;;  %s593_s18 = sshll.u32 %s590_s8, 4  ;;  %s1244_s18 = int_to_ptr.hbm [resolvable:$true] %s593_s18 }
  0x33   : > { %v278_v18 = vmul.f32 0.25, %v262_v16  ;;  %v263_v20 = vld [vmem:[%s1123_s16 + $0x20] sm:$0xff]  ;;  %v287_v21 = vmul.f32 0.25, %v271_v19  ;;  %v264_v24 = vld [vmem:[%s1123_s16 + $0x28] sm:$0xff]  ;;  %v288_v25 = vmul.f32 0.25, %v272_v23  ;;  %v273_v27 = vld [vmem:[%s1123_s16 + $0x70] sm:$0xff] }
  0x34   : > { %v279_v22 = vmul.f32 0.25, %v263_v20  ;;  %v280_v26 = vmul.f32 0.25, %v264_v24  ;;  %v265_v28 = vld [vmem:[%s1123_s16 + $0x30] sm:$0xff]  ;;  %v289_v29 = vmul.f32 0.25, %v273_v27  ;;  %v274_v31 = vld [vmem:[%s1123_s16 + $0x78] sm:$0xff]  ;;  %v499_v1 = vld [vmem:[%s1105_s9 + $0xa0] sm:$0xff] }
  0x35   : > { %v281_v30 = vmul.f32 0.25, %v265_v28  ;;  %v266_v32 = vld [vmem:[%s1123_s16 + $0x38] sm:$0xff]  ;;  %v290_v33 = vmul.f32 0.25, %v274_v31  ;;  %v500_v2 = vld [vmem:[%s1105_s9 + $0xa8] sm:$0xff]  ;;  %v486_v8 = vld [vmem:[%s1105_s9 + $0x38] sm:$0xff]  ;;  %s576_s23 = scalar_lea.sflag [#allocation4], %s1099_s7 }
  0x36   : > { %v282_v34 = vmul.f32 0.25, %v266_v32  ;;  %v485_v7 = vld [vmem:[%s1105_s9 + $0x30] sm:$0xff]  ;;  %v487_v19 = vld [vmem:[%s1105_s9 + $0x40] sm:$0xff]  ;;  %v488_v20 = vld [vmem:[%s1105_s9 + $0x48] sm:$0xff]  ;;  %s897_s5 = sshra.s32 %s1244_s18, 4  ;;  %s903_s11 = scalar_lea.hbm %s1293_s3, 1024  ;;  %s898_s5 = int_to_ptr.hbm [resolvable:$true] %s897_s5 }
  0x37   : > { %v293_v5 = vld.sshfl [vmem:[#allocation1] sm:$0xff pattern:$0x75316420]  ;;  %v294_v6 = vld.sshfl [vmem:[#allocation1 + $0x8] sm:$0xff pattern:$0x75316420]  ;;  %p904_p10 = scmp.lt.s32.totalorder %s898_s5, %s1293_s3 }
  0x38   : > { %767 = vmatpush.msk.msra.mxu2 %vm344_vm0, %v293_v5  ;;  %768 = vmatpush.msk.msra.mxu3 %vm344_vm0, %v294_v6  ;;  %v489_v31 = vld [vmem:[%s1105_s9 + $0x50] sm:$0xff]  ;;  %v490_v32 = vld [vmem:[%s1105_s9 + $0x58] sm:$0xff]  ;;  %s899_s6 = scalar_lea.hbm %s898_s5, 256 }
  0x39   : > { %733 = vmatmul.msk.f32.vlgmr.msra.gmra.mxu2 %vm295_vm1, %v283_v3  ;;  %750 = vmatmul.msk.f32.vlgmr.msra.gmra.mxu3 %vm295_vm1, %v283_v3  ;;  %p900_p6 = scmp.ne.s32.totalorder %s898_s5, %s899_s6  ;;  %p905_p11 = scmp.lt.s32.totalorder %s903_s11, %s899_s6 }
  0x3a   : > { %724 = vmatpush.msk.msra.mxu0 %vm344_vm0, %v293_v5  ;;  %741 = vmatpush.msk.msra.mxu1 %vm344_vm0, %v294_v6 }
  0x3b   : > { %725 = vmatmul.msk.f32.vlgmr.msra.gmra.mxu0 %vm295_vm1, %v275_v4  ;;  %742 = vmatmul.msk.f32.vlgmr.msra.gmra.mxu1 %vm295_vm1, %v275_v4  ;;  %p901_p7 = pnand %p900_p6, %p1074_p9  ;;  %p906_p13 = por %p905_p11, %p904_p10 }
  0x3d   : > { %p902_p8 = pneg %p901_p7 }
  0x3f   : > { %p907_p0 = pnand %p906_p13, %p902_p8 }
  0x41   : > { %734 = vmatmul.msk.f32.gmra.mxu2 %vm295_vm1, %v284_v9  ;;  %751 = vmatmul.msk.f32.gmra.mxu3 %vm295_vm1, %v284_v9 }
  0x43   : > { %726 = vmatmul.msk.f32.gmra.mxu0 %vm295_vm1, %v276_v10  ;;  %743 = vmatmul.msk.f32.gmra.mxu1 %vm295_vm1, %v276_v10 }
  0x49   : > { %735 = vmatmul.msk.f32.gmra.mxu2 %vm295_vm1, %v285_v13  ;;  %752 = vmatmul.msk.f32.gmra.mxu3 %vm295_vm1, %v285_v13  ;;  %v501_v13 = vld [vmem:[%s1105_s9 + $0xb0] sm:$0xff] }
  0x4b   : > { %727 = vmatmul.msk.f32.gmra.mxu0 %vm295_vm1, %v277_v14  ;;  %744 = vmatmul.msk.f32.gmra.mxu1 %vm295_vm1, %v277_v14  ;;  %v502_v14 = vld [vmem:[%s1105_s9 + $0xb8] sm:$0xff] }
  0x51   : > { %736 = vmatmul.msk.f32.gmra.mxu2 %vm295_vm1, %v286_v17  ;;  %753 = vmatmul.msk.f32.gmra.mxu3 %vm295_vm1, %v286_v17 }
  0x53   : > { %728 = vmatmul.msk.f32.gmra.mxu0 %vm295_vm1, %v278_v18  ;;  %745 = vmatmul.msk.f32.gmra.mxu1 %vm295_vm1, %v278_v18 }
  0x59   : > { %737 = vmatmul.msk.f32.gmra.mxu2 %vm295_vm1, %v287_v21  ;;  %754 = vmatmul.msk.f32.gmra.mxu3 %vm295_vm1, %v287_v21 }
  0x5b   : > { %729 = vmatmul.msk.f32.gmra.mxu0 %vm295_vm1, %v279_v22  ;;  %746 = vmatmul.msk.f32.gmra.mxu1 %vm295_vm1, %v279_v22 }
  0x61   : > { %738 = vmatmul.msk.f32.gmra.mxu2 %vm295_vm1, %v288_v25  ;;  %755 = vmatmul.msk.f32.gmra.mxu3 %vm295_vm1, %v288_v25  ;;  %v503_v25 = vld [vmem:[%s1105_s9 + $0xc0] sm:$0xff] }
  0x63   : > { %730 = vmatmul.msk.f32.gmra.mxu0 %vm295_vm1, %v280_v26  ;;  %747 = vmatmul.msk.f32.gmra.mxu1 %vm295_vm1, %v280_v26  ;;  %v504_v26 = vld [vmem:[%s1105_s9 + $0xc8] sm:$0xff] }
  0x69   : > { %739 = vmatmul.msk.f32.gmra.mxu2 %vm295_vm1, %v289_v29  ;;  %756 = vmatmul.msk.f32.gmra.mxu3 %vm295_vm1, %v289_v29 }
  0x6b   : > { %731 = vmatmul.msk.f32.gmra.mxu0 %vm295_vm1, %v281_v30  ;;  %748 = vmatmul.msk.f32.gmra.mxu1 %vm295_vm1, %v281_v30 }
  0x71   : > { %740 = vmatmul.msk.f32.gmra.mxu2 %vm295_vm1, %v290_v33  ;;  %757 = vmatmul.msk.f32.gmra.mxu3 %vm295_vm1, %v290_v33 }
  0x73   : > { %732 = vmatmul.msk.f32.gmra.mxu0 %vm295_vm1, %v282_v34  ;;  %749 = vmatmul.msk.f32.gmra.mxu1 %vm295_vm1, %v282_v34 }
  0xb8   : > { %v366_v37 = vpop.f32.mrf.mxu0  ;;  %v431_v38 = vpop.f32.mrf.mxu1 }
  0xb9   : > { %v511_v39 = vadd.f32 %v479_v35, %v366_v37  ;;  %v512_v40 = vadd.f32 %v480_v36, %v431_v38  ;;  %v505_v37 = vld [vmem:[%s1105_s9 + $0xd0] sm:$0xff]  ;;  %v506_v38 = vld [vmem:[%s1105_s9 + $0xd8] sm:$0xff] }
  0xbb   : > { %543 = vst [vmem:[%s1179_s25] sm:$0xff] %v511_v39 }
  0xbc   : > { %v390_v43 = vpop.f32.mrf.mxu2  ;;  %544 = vst [vmem:[%s1179_s25 + $0x8] sm:$0xff] %v512_v40  ;;  %v455_v44 = vpop.f32.mrf.mxu3 }
  0xbd   : > { %v527_v45 = vadd.f32 %v495_v41, %v390_v43  ;;  %v528_v46 = vadd.f32 %v496_v42, %v455_v44  ;;  %v491_v43 = vld [vmem:[%s1105_s9 + $0x60] sm:$0xff]  ;;  %v492_v44 = vld [vmem:[%s1105_s9 + $0x68] sm:$0xff] }
  0xbf   : > { %559 = vst [vmem:[%s1179_s25 + $0x80] sm:$0xff] %v527_v45 }
  0xc0   : > { %560 = vst [vmem:[%s1179_s25 + $0x88] sm:$0xff] %v528_v46  ;;  %v369_v49 = vpop.f32.mrf.mxu0  ;;  %v434_v50 = vpop.f32.mrf.mxu1 }
  0xc1   : > { %v513_v51 = vadd.f32 %v481_v47, %v369_v49  ;;  %v514_v52 = vadd.f32 %v482_v48, %v434_v50  ;;  %v507_v49 = vld [vmem:[%s1105_s9 + $0xe0] sm:$0xff]  ;;  %v508_v50 = vld [vmem:[%s1105_s9 + $0xe8] sm:$0xff] }
  0xc3   : > { %545 = vst [vmem:[%s1179_s25 + $0x10] sm:$0xff] %v513_v51 }
  0xc4   : > { %v393_v55 = vpop.f32.mrf.mxu2  ;;  %546 = vst [vmem:[%s1179_s25 + $0x18] sm:$0xff] %v514_v52  ;;  %v458_v56 = vpop.f32.mrf.mxu3 }
  0xc5   : > { %v529_v57 = vadd.f32 %v497_v53, %v393_v55  ;;  %v530_v58 = vadd.f32 %v498_v54, %v458_v56  ;;  %v493_v55 = vld [vmem:[%s1105_s9 + $0x70] sm:$0xff]  ;;  %v494_v56 = vld [vmem:[%s1105_s9 + $0x78] sm:$0xff] }
  0xc7   : > { %561 = vst [vmem:[%s1179_s25 + $0x90] sm:$0xff] %v529_v57 }
  0xc8   : > { %562 = vst [vmem:[%s1179_s25 + $0x98] sm:$0xff] %v530_v58  ;;  %v372_v61 = vpop.f32.mrf.mxu0  ;;  %v437_v62 = vpop.f32.mrf.mxu1 }
  0xc9   : > { %v515_v63 = vadd.f32 %v483_v59, %v372_v61  ;;  %v516_v0 = vadd.f32 %v484_v60, %v437_v62  ;;  %v509_v61 = vld [vmem:[%s1105_s9 + $0xf0] sm:$0xff]  ;;  %v510_v62 = vld [vmem:[%s1105_s9 + $0xf8] sm:$0xff] }
  0xcb   : > { %547 = vst [vmem:[%s1179_s25 + $0x20] sm:$0xff] %v515_v63 }
  0xcc   : > { %v396_v3 = vpop.f32.mrf.mxu2  ;;  %548 = vst [vmem:[%s1179_s25 + $0x28] sm:$0xff] %v516_v0  ;;  %v461_v4 = vpop.f32.mrf.mxu3 }
  0xcd   : > { %v531_v5 = vadd.f32 %v499_v1, %v396_v3  ;;  %v532_v6 = vadd.f32 %v500_v2, %v461_v4 }
  0xcf   : > { %563 = vst [vmem:[%s1179_s25 + $0xa0] sm:$0xff] %v531_v5 }
  0xd0   : > { %564 = vst [vmem:[%s1179_s25 + $0xa8] sm:$0xff] %v532_v6  ;;  %v375_v9 = vpop.f32.mrf.mxu0  ;;  %v440_v10 = vpop.f32.mrf.mxu1 }
  0xd1   : > { %v517_v11 = vadd.f32 %v485_v7, %v375_v9  ;;  %v518_v12 = vadd.f32 %v486_v8, %v440_v10 }
  0xd3   : > { %549 = vst [vmem:[%s1179_s25 + $0x30] sm:$0xff] %v517_v11 }
  0xd4   : > { %v399_v15 = vpop.f32.mrf.mxu2  ;;  %550 = vst [vmem:[%s1179_s25 + $0x38] sm:$0xff] %v518_v12  ;;  %v464_v16 = vpop.f32.mrf.mxu3 }
  0xd5   : > { %v533_v17 = vadd.f32 %v501_v13, %v399_v15  ;;  %v534_v18 = vadd.f32 %v502_v14, %v464_v16 }
  0xd7   : > { %565 = vst [vmem:[%s1179_s25 + $0xb0] sm:$0xff] %v533_v17 }
  0xd8   : > { %566 = vst [vmem:[%s1179_s25 + $0xb8] sm:$0xff] %v534_v18  ;;  %v378_v21 = vpop.f32.mrf.mxu0  ;;  %v443_v22 = vpop.f32.mrf.mxu1 }
  0xd9   : > { %v519_v23 = vadd.f32 %v487_v19, %v378_v21  ;;  %v520_v24 = vadd.f32 %v488_v20, %v443_v22 }
  0xdb   : > { %551 = vst [vmem:[%s1179_s25 + $0x40] sm:$0xff] %v519_v23 }
  0xdc   : > { %v402_v27 = vpop.f32.mrf.mxu2  ;;  %552 = vst [vmem:[%s1179_s25 + $0x48] sm:$0xff] %v520_v24  ;;  %v467_v28 = vpop.f32.mrf.mxu3 }
  0xdd   : > { %v535_v29 = vadd.f32 %v503_v25, %v402_v27  ;;  %v536_v30 = vadd.f32 %v504_v26, %v467_v28 }
  0xdf   : > { %567 = vst [vmem:[%s1179_s25 + $0xc0] sm:$0xff] %v535_v29 }
  0xe0   : > { %568 = vst [vmem:[%s1179_s25 + $0xc8] sm:$0xff] %v536_v30  ;;  %v381_v33 = vpop.f32.mrf.mxu0  ;;  %v446_v34 = vpop.f32.mrf.mxu1 }
  0xe1   : > { %v521_v35 = vadd.f32 %v489_v31, %v381_v33  ;;  %v522_v36 = vadd.f32 %v490_v32, %v446_v34 }
  0xe3   : > { %553 = vst [vmem:[%s1179_s25 + $0x50] sm:$0xff] %v521_v35 }
  0xe4   : > { %v405_v39 = vpop.f32.mrf.mxu2  ;;  %554 = vst [vmem:[%s1179_s25 + $0x58] sm:$0xff] %v522_v36  ;;  %v470_v40 = vpop.f32.mrf.mxu3 }
  0xe5   : > { %v537_v41 = vadd.f32 %v505_v37, %v405_v39  ;;  %v538_v42 = vadd.f32 %v506_v38, %v470_v40 }
  0xe7   : > { %569 = vst [vmem:[%s1179_s25 + $0xd0] sm:$0xff] %v537_v41 }
  0xe8   : > { %570 = vst [vmem:[%s1179_s25 + $0xd8] sm:$0xff] %v538_v42  ;;  %v384_v45 = vpop.f32.mrf.mxu0  ;;  %v449_v46 = vpop.f32.mrf.mxu1 }
  0xe9   : > { %v523_v47 = vadd.f32 %v491_v43, %v384_v45  ;;  %v524_v48 = vadd.f32 %v492_v44, %v449_v46 }
  0xeb   : > { %555 = vst [vmem:[%s1179_s25 + $0x60] sm:$0xff] %v523_v47 }
  0xec   : > { %v408_v51 = vpop.f32.mrf.mxu2  ;;  %556 = vst [vmem:[%s1179_s25 + $0x68] sm:$0xff] %v524_v48  ;;  %v473_v52 = vpop.f32.mrf.mxu3 }
  0xed   : > { %v539_v53 = vadd.f32 %v507_v49, %v408_v51  ;;  %v540_v54 = vadd.f32 %v508_v50, %v473_v52 }
  0xef   : > { %571 = vst [vmem:[%s1179_s25 + $0xe0] sm:$0xff] %v539_v53 }
  0xf0   : > { %572 = vst [vmem:[%s1179_s25 + $0xe8] sm:$0xff] %v540_v54  ;;  %v387_v57 = vpop.f32.mrf.mxu0  ;;  %v452_v58 = vpop.f32.mrf.mxu1 }
  0xf1   : > { %v525_v59 = vadd.f32 %v493_v55, %v387_v57  ;;  %v526_v60 = vadd.f32 %v494_v56, %v452_v58 }
  0xf3   : > { %557 = vst [vmem:[%s1179_s25 + $0x70] sm:$0xff] %v525_v59 }
  0xf4   : > { %v411_v63 = vpop.f32.mrf.mxu2  ;;  %558 = vst [vmem:[%s1179_s25 + $0x78] sm:$0xff] %v526_v60  ;;  %v476_v0 = vpop.f32.mrf.mxu3 }
  0xf5   : > { %v541_v1 = vadd.f32 %v509_v61, %v411_v63  ;;  %v542_v2 = vadd.f32 %v510_v62, %v476_v0 }
  0xf7   : > { %573 = vst [vmem:[%s1179_s25 + $0xf0] sm:$0xff] %v541_v1 }
  0xf8   : > { %574 = vst [vmem:[%s1179_s25 + $0xf8] sm:$0xff] %v542_v2 }
  0xf9   : > { %910 = shalt.err (!%p907_p0)
}
  0xfa   : > { %s986_s7 = smov 256   ;;  %s987_s21 = smov 512  }
  0xfb   : > { %s988_s16 = smov 16  }
  0xfc   : > { %771 = dma.vmem_to_hbm [thread:$0]  (%p1074_p9), %s592_s22, 4096, %s1244_s18, %s576_s23, %s986_s7, %s987_s21, %s988_s16  }
  0xfd PF: > { %p782_p1 = scmp.ge.s32.totalorder %s981_s19, 2  ;;  %s608_s25 = sand.u32 1, %s953_s12  }
  0xfe   : > { %s609_s29 = scalar_lea.sflag [#allocation4], %s608_s25 }
  0xff   : > { %p778_p2 = pnand %p782_p1, %p1080_p12 }
 0x101   : > { %p779_p4 = pneg %p778_p2 }
 0x103   : > { %948 = dma.done.wait (%p779_p4), %s609_s29, 4096  }
 0x104   : > { %950 = vsyncadd (%p779_p4), %s609_s29, 4294963200  ;;  %s19_s19 = sadd.s32 1, %s981_s19   ;;  %s1305_s30 = sld [smem:[#allocation11_spill]] }
 0x105   : > { %p16_p3 = scmp.ge.s32.totalorder %s19_s19, 6   ;;  %s1306_s16 = sld [smem:[#allocation8_spill]] }
 0x106   : > { %s1307_s28 = sld [smem:[#allocation9_spill]]  ;;  %s1309_s12 = smov %s957_s13 }
 0x107   : > { %s1308_s18 = sld [smem:[#allocation10_spill]]  ;;  %s1310_s13 = smov %s961_s14 }
 0x108   : > { %s1312_s15 = smov %s973_s17  ;;  %18 = sbr.rel (!%p16_p3) target bundleno = 7 (0x7), region = 83 }
 0x10a   : > { %s1311_s14 = smov %s1305_s30 }
 0x10c   : > { %s1313_s17 = smov %s1307_s28 }
 0x10d   :  { %615 = vsyncpa [#allocation3], 1 }
 0x10e   :  { %617 = vsyncpa [#allocation3 + $0x1], 1 }
 0x10f   :  { %618 = vsyncpa [#allocation4], 1 }
 0x110   :  { %620 = vsyncpa [#allocation4 + $0x1], 1 }

</bundles_post_ra>
